<compile_context>
chip_gen: v7x
topology: tpu7x:2x2x1
jax: 0.10.0
libtpu: 0.0.40
codegen_flags: <defaults>
</compile_context>

<pallas_src>
import numpy as np
import jax
import jax.numpy as jnp
from jax import lax
from jax.experimental import pallas as pl
from jax.experimental.pallas import tpu as pltpu


# ----------------------------------------------------------------------------
# Pallas kernel: fused (strided conv as one matmul) + bias + ReLU
# ----------------------------------------------------------------------------
def _downconv_bias_relu_kernel(x_ref, w_ref, b_ref, o_ref):
    # x_ref: (1, K, Rt)  im2col'd input tile (bf16), Rt on the lane axis
    # w_ref: (Cout, K)   folded weights (bf16)
    # b_ref: (Cout, 1)   bias column (f32)
    # o_ref: (1, Cout, Rt)
    acc = jnp.dot(w_ref[...], x_ref[0], preferred_element_type=jnp.float32)
    acc = acc + b_ref[...]                       # f32 broadcast along lanes
    o_ref[0] = jnp.maximum(acc, 0.0).astype(o_ref.dtype)


# ----------------------------------------------------------------------------
# VMEM-budget-aware tile selection
# ----------------------------------------------------------------------------
def _vmem_budget_bytes():
    try:
        cap = pltpu.get_tpu_info().vmem_capacity_bytes
    except Exception:
        cap = 64 << 20   # conservative (v7x per-TC VMEM)
    # keep roughly half of physical VMEM as headroom; cap for the big-VMEM gens
    return min(cap // 2, 48 << 20)


def _pick_row_tile(rows_p, k, cout, x_bytes, n_batch, budget_bytes):
    """Largest lane-aligned (x128) divisor of rows_p whose pipelined footprint
    fits the VMEM budget; keep >=2 grid programs when possible (v7x megacore)."""
    assert rows_p % 128 == 0
    m = rows_p // 128

    def vmem_est(tile):
        return (2 * k * tile * x_bytes                 # x tile, double-buffered
                + 2 * cout * tile * 4                  # f32 out tile, double-buffered
                + 2 * (cout * k * x_bytes + cout * 4)) # weights + bias

    divs = [128 * d for d in range(m, 0, -1) if m % d == 0]   # descending
    tile = next((t for t in divs if vmem_est(t) <= budget_bytes), 128)
    if n_batch * (rows_p // tile) < 2:                 # give both TCs work on v7x
        for t in divs:
            if rows_p // t >= 2 and vmem_est(t) <= budget_bytes:
                tile = t
                break
    return tile


# ----------------------------------------------------------------------------
# Wrapper: DownsamplingConvBlock.forward
# ----------------------------------------------------------------------------
def downsampling_conv_block_forward(x, conv_w, conv_b, stride=2):
    """x: (N, Cin, D, H, W); conv_w: (Cout, Cin, s, s, s) [PyTorch OIDHW];
    conv_b: (Cout,).  Returns (N, Cout, D//s, H//s, W//s)."""
    n, cin, d, h, w = x.shape
    cout = conv_w.shape[0]
    s = stride
    assert d % s == 0 and h % s == 0 and w % s == 0, \
        "spatial dims must be divisible by stride (VNet usage)"
    do, ho, wo = d // s, h // s, w // s
    rows = do * ho * wo
    k = s * s * s * cin
    mxu_dtype = jnp.bfloat16
    x_bytes = jnp.dtype(mxu_dtype).itemsize

    # --- im2col by pure reshape/transpose (non-overlapping windows) ----------
    # (N,Cin,Do,s,Ho,s,Wo,s) -> (N, s,s,s,Cin, Do,Ho,Wo) -> (N, K, R)
    # (fused into the pallas input DMA via allow_input_fusion)
    x_r = x.reshape(n, cin, do, s, ho, s, wo, s)
    x_r = jnp.transpose(x_r, (0, 3, 5, 7, 1, 2, 4, 6)).reshape(n, k, rows)
    x_r = x_r.astype(mxu_dtype)

    # pad R up to a multiple of 128 -> always unmasked lane-dense stores
    rows_p = ((rows + 127) // 128) * 128
    if rows_p != rows:
        x_r = jnp.pad(x_r, ((0, 0), (0, 0), (0, rows_p - rows)))

    # weights: (Cout,Cin,s,s,s) -> (Cout, s,s,s, Cin) -> (Cout, K)  (matches
    # the (kd,kh,kw,cin) ordering of the K axis above)
    w_r = jnp.transpose(conv_w, (0, 2, 3, 4, 1)).reshape(cout, k).astype(mxu_dtype)
    b_r = conv_b.reshape(cout, 1).astype(jnp.float32)

    budget = _vmem_budget_bytes()
    tile = _pick_row_tile(rows_p, k, cout, x_bytes, n, budget)
    grid = (n, rows_p // tile)

    cost = pl.CostEstimate(
        flops=2 * n * cout * k * rows_p,
        transcendentals=0,
        bytes_accessed=(n * k * rows_p * x_bytes + cout * k * x_bytes
                        + cout * 4 + n * cout * rows_p * 4))

    out_flat = pl.pallas_call(
        _downconv_bias_relu_kernel,
        out_shape=jax.ShapeDtypeStruct((n, cout, rows_p), x.dtype),
        grid=grid,
        in_specs=[
            pl.BlockSpec((1, k, tile), lambda i, j: (i, 0, j)),
            pl.BlockSpec((cout, k), lambda i, j: (0, 0)),
            pl.BlockSpec((cout, 1), lambda i, j: (0, 0)),
        ],
        out_specs=pl.BlockSpec((1, cout, tile), lambda i, j: (i, 0, j)),
        compiler_params=pltpu.CompilerParams(
            dimension_semantics=("parallel", "parallel"),
            vmem_limit_bytes=int(budget + (8 << 20)),
            allow_input_fusion=[True, False, False]),
        cost_estimate=cost,
    )(x_r, w_r, b_r)

    # drop lane padding; rows axis unpacks straight back to (Do, Ho, Wo).
    if rows_p != rows:
        out_flat = out_flat[:, :, :rows]
    return out_flat.reshape(n, cout, do, ho, wo)


# ----------------------------------------------------------------------------
# pure-JAX reference for a correctness check
# ----------------------------------------------------------------------------
def _reference_forward(x, conv_w, conv_b, stride=2):
    out = lax.conv_general_dilated(
        x, conv_w,
        window_strides=(stride, stride, stride),
        padding='VALID',
        dimension_numbers=('NCDHW', 'OIDHW', 'NCDHW'))
    return jnp.maximum(out + conv_b.reshape(1, -1, 1, 1, 1), 0.0)


if __name__ == "__main__":
    # Module config: n_filters_in=4, n_filters_out=8, stride=2,
    # normalization='none'  ->  ReLU(Conv3d(k=2, stride=2, pad=0)(x))
    N, CIN, COUT, D, H, W, STRIDE = 2, 4, 8, 16, 16, 16, 2

    key = jax.random.PRNGKey(0)
    kx, kw, kb = jax.random.split(key, 3)
    x = jax.random.normal(kx, (N, CIN, D, H, W), dtype=jnp.float32)
    conv_w = jax.random.normal(
        kw, (COUT, CIN, STRIDE, STRIDE, STRIDE), dtype=jnp.float32) * 0.1
    conv_b = jax.random.normal(kb, (COUT,), dtype=jnp.float32) * 0.1

    out = downsampling_conv_block_forward(x, conv_w, conv_b, stride=STRIDE)
    out = jax.block_until_ready(out)

    ref = jax.block_until_ready(_reference_forward(x, conv_w, conv_b, STRIDE))
    assert out.shape == (N, COUT, D // STRIDE, H // STRIDE, W // STRIDE)
    # bf16 MXU operands with f32 accumulation -> loosened tolerance
    np.testing.assert_allclose(np.asarray(out), np.asarray(ref),
                               rtol=2e-2, atol=2e-2)
    print("KERNEL_OK")
</pallas_src>

<mosaic_0001>
module attributes {stable_mosaic.version = 11 : i64} {
  func.func @_downconv_bias_relu_kernel(%arg0: i32, %arg1: i32, %arg2: memref<1x32x512xbf16, #tpu.memory_space<vmem>>, %arg3: memref<8x32xbf16, #tpu.memory_space<vmem>>, %arg4: memref<8x1xf32, #tpu.memory_space<vmem>>, %arg5: memref<1x8x512xf32, #tpu.memory_space<vmem>>) attributes {dimension_semantics = [#tpu.dimension_semantics<parallel>, #tpu.dimension_semantics<parallel>], iteration_bounds = array<i64: 2, 1>, scalar_prefetch = 0 : i64, scratch_operands = 0 : i64, tpu.core_type = #tpu.core_type<tc>, window_params = [{transform_indices = @transform_0, window_bounds = array<i64: 1, 32, 512>}, {pipeline_mode = #tpu.pipeline_mode<synchronous>, transform_indices = @transform_1, window_bounds = array<i64: 8, 32>}, {pipeline_mode = #tpu.pipeline_mode<synchronous>, transform_indices = @transform_2, window_bounds = array<i64: 8, 1>}, {transform_indices = @transform_3, window_bounds = array<i64: 1, 8, 512>}]} {
    %c0 = arith.constant 0 : index
    %c0_0 = arith.constant 0 : index
    %0 = vector.load %arg3[%c0, %c0_0] : memref<8x32xbf16, #tpu.memory_space<vmem>>, vector<8x32xbf16>
    %c0_1 = arith.constant 0 : index
    %c0_2 = arith.constant 0 : index
    %c0_3 = arith.constant 0 : index
    %1 = vector.load %arg2[%c0_1, %c0_2, %c0_3] : memref<1x32x512xbf16, #tpu.memory_space<vmem>>, vector<1x32x512xbf16>
    %2 = vector.shape_cast %1 : vector<1x32x512xbf16> to vector<32x512xbf16>
    %cst = arith.constant dense<0.000000e+00> : vector<8x512xf32>
    %3 = tpu.matmul %0, %2, %cst {dimension_numbers = #tpu.dot_dimension_numbers<[1], [0], [0], [1], [0, 0, 1, 1], [], []>} : vector<8x32xbf16>, vector<32x512xbf16>, vector<8x512xf32> -> vector<8x512xf32>
    %c0_4 = arith.constant 0 : index
    %c0_5 = arith.constant 0 : index
    %4 = vector.load %arg4[%c0_4, %c0_5] : memref<8x1xf32, #tpu.memory_space<vmem>>, vector<8x1xf32>
    %5 = vector.broadcast %4 : vector<8x1xf32> to vector<8x512xf32>
    %6 = arith.addf %3, %5 : vector<8x512xf32>
    %cst_6 = arith.constant 0.000000e+00 : f32
    %7 = vector.broadcast %cst_6 : f32 to vector<8x512xf32>
    %8 = arith.maximumf %6, %7 : vector<8x512xf32>
    %c0_7 = arith.constant 0 : index
    %c0_8 = arith.constant 0 : index
    %c0_9 = arith.constant 0 : index
    %9 = vector.load %arg5[%c0_7, %c0_8, %c0_9] : memref<1x8x512xf32, #tpu.memory_space<vmem>>, vector<1x8x512xf32>
    %10 = vector.shape_cast %9 : vector<1x8x512xf32> to vector<8x512xf32>
    %11 = vector.shape_cast %8 : vector<8x512xf32> to vector<1x8x512xf32>
    tpu.vector_store %arg5[%c0_7, %c0_8, %c0_9], %11 {strides = array<i32>} : memref<1x8x512xf32, #tpu.memory_space<vmem>>, vector<1x8x512xf32>,
    return
  }
  func.func @transform_0(%arg0: i32, %arg1: i32) -> (i32, i32, i32) {
    %c0_i32 = arith.constant 0 : i32
    %c0_i32_0 = arith.constant 0 : i32
    return %arg0, %c0_i32, %arg1 : i32, i32, i32
  }
  func.func @transform_1(%arg0: i32, %arg1: i32) -> (i32, i32) {
    %c0_i32 = arith.constant 0 : i32
    %c0_i32_0 = arith.constant 0 : i32
    %c0_i32_1 = arith.constant 0 : i32
    return %c0_i32, %c0_i32_0 : i32, i32
  }
  func.func @transform_2(%arg0: i32, %arg1: i32) -> (i32, i32) {
    %c0_i32 = arith.constant 0 : i32
    %c0_i32_0 = arith.constant 0 : i32
    %c0_i32_1 = arith.constant 0 : i32
    return %c0_i32, %c0_i32_0 : i32, i32
  }
  func.func @transform_3(%arg0: i32, %arg1: i32) -> (i32, i32, i32) {
    %c0_i32 = arith.constant 0 : i32
    %c0_i32_0 = arith.constant 0 : i32
    return %arg0, %c0_i32, %arg1 : i32, i32, i32
  }
}

</mosaic_0001>

<bundles_post_ra>
// kernel: tpu_custom_call.1
= control target key start
LH: loop header
LB: loop body
LE: loop exit
PB: predicated region body
PF: predicated region fallthrough
CT: control target
= control target key end

     0   :  { %8 = vsyncpa [#allocation3], 0  ;;  %s884_s0 = inlined_call_operand.hbm [shape: bf16[2,32,512], index: 0, kind: input, shape index: {}]   ;;  %s885_s1 = inlined_call_operand.vmem [shape: bf16[8,32], index: 1, kind: input, shape index: {}]   ;;  %s886_s2 = inlined_call_operand.vmem [shape: f32[8,1], index: 2, kind: input, shape index: {}]   ;;  %s887_s3 = inlined_call_operand.hbm [shape: f32[2,8,512], index: 3, kind: output, shape index: {}]  }
   0x1   :  { %10 = vsyncpa [#allocation3 + $0x1], 0 }
   0x2   :  { %11 = vsyncpa [#allocation4], 0 }
   0x3   :  { %13 = vsyncpa [#allocation4 + $0x1], 0  ;;  %s704_s12 = smov 0   ;;  %s706_s13 = smov 0  }
   0x4   :  { %s708_s14 = smov 0   ;;  %s710_s15 = smov 0  }
   0x5   :  { %s712_s16 = smov 0   ;;  %s714_s17 = smov 0  }
   0x6 LB: > { %s460_s18 = sadd.s32 4294967295, %s677_s17   ;;  %s461_s19 = sadd.s32 4294967294, %s677_s17   ;;  %s677_s17 = sphi %s714_s17, %s19_s17   ;;  %s673_s16 = sphi %s712_s16, %s902_s16   ;;  %s669_s15 = sphi %s710_s15, %s901_s15   ;;  %s665_s14 = sphi %s708_s14, %s900_s14   ;;  %s661_s13 = sphi %s706_s13, %s899_s13   ;;  %s657_s12 = sphi %s704_s12, %s898_s12  }
   0x7   : > { %s31_s20 = sadd.s32 1, %s673_s16  ;;  %s40_s21 = sadd.s32 1, %s665_s14 }
   0x8   : > { %p33_p0 = scmp.ge.s32.totalorder %s31_s20, 2  ;;  %p47_p1 = scmp.ne.s32.totalorder %s665_s14, %s661_s13 }
   0x9   : > { %p48_p2 = scmp.eq.s32.totalorder %s677_s17, 0  ;;  %p53_p3 = scmp.ne.s32.totalorder %s661_s13, %s657_s12 }
   0xa   : > { %s904_s20 = smov (%p33_p0, %s31_s20), 0  ;;  %p54_p5 = scmp.eq.s32.totalorder %s460_s18, 0 }
   0xb   : > { %p745_p4 = por %p48_p2, %p47_p1  ;;  %s35_s23 = ssub.s32 %s673_s16, %s904_s20 }
   0xc   : > { %p121_p6 = scmp.eq.s32.totalorder %s460_s18, 1  ;;  %p38_p7 = scmp.eq.s32.totalorder %s35_s23, 0 }
   0xd   : > { %p751_p8 = por %p54_p5, %p53_p3  ;;  %p127_p10 = scmp.eq.s32.totalorder %s461_s19, 1 }
   0xe   : > { %p755_p9 = por %p121_p6, %p47_p1  ;;  %p499_p13 = scmp.lt.s32.totalorder %s677_s17, 2 }
   0xf   : > { %s760_s26 = scalar_select %p38_p7, %s665_s14, %s40_s21  }
  0x10   : > { %s891_s25 = scalar_select %p755_p9, 1, 0 }
  0x11   : > { %p762_p11 = por %p127_p10, %p53_p3  ;;  %s153_s28 = sand.u32 1, %s665_s14  }
  0x12   : > { %s464_s29 = sshll.u32 %s153_s28, 6  ;;  %s485_s30 = sshll.u32 %s673_s16, 10 }
  0x13   : > { %s892_s27 = scalar_select %p762_p11, 1, 0 }
  0x14   : > { %s773_s6 = scalar_lea.hbm %s884_s0, %s485_s30  ;;  %s157_s7 = scalar_lea.vmem [#allocation2], %s464_s29 }
  0x15   : > { %s166_s8 = sshll.u32 %s157_s7, 4  ;;  %p779_p0 = pnand %p499_p13, %p745_p4  ;;  %s775_s8 = int_to_ptr.vmem [resolvable:$true] %s166_s8 }
  0x16   : > { %s784_s10 = scalar_lea.sflag [#allocation3], %s153_s28  ;;  %s565_s11 = scalar_lea.hbm %s773_s6, 1024 }
  0x17   : > { %p566_p2 = scmp.ne.s32.totalorder %s773_s6, %s565_s11  ;;  %p567_p3 = pneg %p779_p0 }
  0x18   : > { %s570_s21 = scalar_lea.hbm %s884_s0, 2048  ;;  %p571_p4 = scmp.lt.u32.totalorder %s773_s6, %s884_s0 }
  0x19   : > { %p568_p5 = pnand %p567_p3, %p566_p2  ;;  %p572_p7 = scmp.lt.u32.totalorder %s570_s21, %s565_s11 }
  0x1a   : > { %p574_p13 = scmp.lt.u32.totalorder %s565_s11, %s773_s6 }
  0x1b   : > { %p569_p6 = pneg %p568_p5  ;;  %p573_p10 = por %p572_p7, %p571_p4 }
  0x1d   : > { %p575_p12 = por %p574_p13, %p573_p10 }
  0x1f   : > { %p576_p1 = pnand %p575_p12, %p569_p6 }
  0x21   : > { %579 = shalt.err (!%p576_p1)
}
  0x22   : > { %s580_s28 = scalar_lea.vmem %s775_s8, 1024  ;;  %s679_s29 = smov [#allocation2]  }
  0x23   : > { %p581_p2 = scmp.ne.s32.totalorder %s775_s8, %s580_s28  ;;  %s585_s30 = sshll.u32 %s679_s29, 4  ;;  %s586_s30 = int_to_ptr.vmem [resolvable:$false] %s585_s30 }
  0x24   : > { %s587_s4 = scalar_lea.vmem %s586_s30, 2048  ;;  %p588_p9 = scmp.lt.s32.totalorder %s775_s8, %s586_s30 }
  0x25   : > { %p583_p5 = pnand %p581_p2, %p567_p3  ;;  %p589_p4 = scmp.lt.s32.totalorder %s587_s4, %s580_s28 }
  0x27   : > { %p584_p11 = pneg %p583_p5  ;;  %p590_p7 = por %p589_p4, %p588_p9 }
  0x29   : > { %p591_p10 = pnand %p590_p7, %p584_p11 }
  0x2b   : > { %594 = shalt.err (!%p591_p10)
}
  0x2c   : > { %s680_s5 = smov 256   ;;  %s681_s7 = smov 16  }
  0x2d   : > { %494 = dma.hbm_to_vmem [thread:$0]  (!%p779_p0), %s773_s6, 1024, %s775_s8, %s784_s10, %s680_s5, %s680_s5, %s681_s7  }
  0x2e   : > { %p174_p12 = scmp.lt.s32.totalorder %s677_s17, 3  ;;  %p894_p1 = scmp.ge.s32.totalorder %s677_s17, 1 }
  0x30   : > { %p175_p3 = pnand %p894_p1, %p174_p12 }
  0x31   : > { %s816_s11 = sand.u32 (!%p175_p3), 1, %s661_s13  }
  0x32   : > { %178 = sbr.rel (%p175_p3) target bundleno = 300 (0x12c), region = 32  ;;  %s468_s18 = sshll.u32 (!%p175_p3), %s816_s11, 6 }
  0x33   : > { %s181_s19 = scalar_lea.sflag (!%p175_p3), [#allocation3], %s816_s11  ;;  %s184_s21 = scalar_lea.vmem (!%p175_p3), [#allocation2], %s468_s18 }
  0x39   : > { %648 = dma.done.wait (%p751_p8), %s181_s19, 1024  }
  0x3a   : > { %650 = vsyncadd (%p751_p8), %s181_s19, 4294966272  ;;  %v682_v0 = vmov 0   ;;  %v553_v1 = vld [vmem:[%s184_s21 + $0x4] ss:$16 sps:$4 sm:$0xff]   ;;  %v555_v2 = vld [vmem:[%s184_s21 + $0xc] ss:$16 sps:$4 sm:$0xff]  }
  0x3b   : > { %301 = vmatprep.mubr.bf16.mxu0 %v682_v0  ;;  %342 = vmatprep.mubr.bf16.mxu1 %v682_v0  ;;  %v557_v3 = vld [vmem:[%s184_s21] ss:$16 sps:$4 sm:$0xff]   ;;  %v558_v4 = vld [vmem:[%s184_s21 + $0x8] ss:$16 sps:$4 sm:$0xff]   ;;  %v559_v5 = vld [vmem:[%s184_s21 + $0x24] ss:$16 sps:$4 sm:$0xff]  }
  0x3c   : > { %552 = vset.pattern.permute.xlu0 %v682_v0  ;;  %269 = vmatprep.subr.bf16.mxu0 %v553_v1  ;;  %v561_v6 = vld [vmem:[%s184_s21 + $0x2c] ss:$16 sps:$4 sm:$0xff]   ;;  %v563_v7 = vld [vmem:[%s184_s21 + $0x20] ss:$16 sps:$4 sm:$0xff]   ;;  %v564_v8 = vld [vmem:[%s184_s21 + $0x28] ss:$16 sps:$4 sm:$0xff]  }
  0x3d   : > { %310 = vmatprep.subr.bf16.mxu1 %v555_v2  ;;  %270 = vmatpush1.bf16.msra.mxu0 %v557_v3  ;;  %v219_v9 = vld [vmem:[%s886_s2] sm:$0xff]  ;;  %vm265_vm0 = vcmask 261120   ;;  %s469_s10 = sshll.u32 %s816_s11, 5  ;;  %s486_s22 = sshll.u32 %s669_s15, 9 }
  0x3e   : > { %311 = vmatpush1.bf16.msra.mxu1 %v558_v4  ;;  %271 = vmatprep.subr.bf16.mxu0 %v559_v5  ;;  %v210_v10 = vld [vmem:[%s885_s1] sm:$0xf]  ;;  %s206_s23 = scalar_lea.vmem [#allocation5], %s469_s10  ;;  %s835_s4 = scalar_lea.hbm %s887_s3, %s486_s22 }
  0x3f   : > { %312 = vmatprep.subr.bf16.mxu1 %v561_v6  ;;  %222 = vperm.xlu0 %552, %v219_v9   ;;  %s376_s28 = sshll.u32 %s206_s23, 4  ;;  %s360_s15 = scalar_lea.sflag [#allocation4], %s816_s11  ;;  %s837_s28 = int_to_ptr.vmem [resolvable:$true] %s376_s28 }
  0x40   : > { %s595_s5 = scalar_lea.vmem %s837_s28, 512  ;;  %p895_p9 = scmp.ne.s32.totalorder %s891_s25, 0 }
  0x41   : > { %272 = vmatpush1.bf16.msra.mxu0 %v563_v7  ;;  %p596_p8 = scmp.ne.s32.totalorder %s837_s28, %s595_s5  ;;  %s683_s7 = smov [#allocation5]  }
  0x42   : > { %313 = vmatpush1.bf16.msra.mxu1 %v564_v8  ;;  %s599_s18 = sshll.u32 %s683_s7, 4  ;;  %s600_s18 = int_to_ptr.vmem [resolvable:$false] %s599_s18 }
  0x43   : > { %p597_p11 = pnand %p596_p8, %p895_p9  ;;  %s601_s19 = scalar_lea.vmem %s600_s18, 1024 }
  0x44   : > { %478 = vmatmul.mubr.msk.bf16.vlgmr.msra.gmra.mrb[0].mxu0 %vm265_vm0, %v210_v10  ;;  %p602_p6 = scmp.lt.s32.totalorder %s837_s28, %s600_s18  ;;  %p603_p13 = scmp.lt.s32.totalorder %s601_s19, %s595_s5 }
  0x45   : > { %479 = vmatmul.mubr.msk.bf16.vlgmr.msra.gmra.mrb[0].mxu1 %vm265_vm0, %v210_v10  ;;  %p598_p0 = pneg %p597_p11 }
  0x46   : > { %p604_p2 = por %p603_p13, %p602_p6 }
  0x48   : > { %p605_p5 = pnand %p604_p2, %p598_p0 }
  0xbe   : > { %v223_v11 = vpop.permute.xlu0 %222 }
 0x117   : > { %v303_v12 = vpop.f32.mrb[0].mxu0 }
 0x118   : > { %v344_v13 = vpop.f32.mrb[0].mxu1  ;;  %v304_v14 = vadd.f32 %v303_v12, %v223_v11  ;;  %v305_v16 = vpop.f32.mrb[1].mxu0 }
 0x119   : > { %v345_v15 = vadd.f32 %v344_v13, %v223_v11  ;;  %v346_v17 = vpop.f32.mrb[1].mxu1  ;;  %v306_v18 = vadd.f32 %v305_v16, %v223_v11  ;;  %v307_v20 = vpop.f32.mrb[2].mxu0 }
 0x11a   : > { %v347_v19 = vadd.f32 %v346_v17, %v223_v11  ;;  %v348_v21 = vpop.f32.mrb[2].mxu1  ;;  %v351_v22 = vmax.f32 %v304_v14, 0.0  ;;  %v308_v24 = vpop.f32.mrb[3].mxu0 }
 0x11b   : > { %v353_v23 = vmax.f32 %v345_v15, 0.0  ;;  %v349_v25 = vpop.f32.mrb[3].mxu1  ;;  %v352_v26 = vmax.f32 %v306_v18, 0.0 }
 0x11c   : > { %v354_v27 = vmax.f32 %v347_v19, 0.0  ;;  %355 = vst [vmem:[%s206_s23] sm:$0xff] %v351_v22 }
 0x11d   : > { %357 = vst [vmem:[%s206_s23 + $0x10] sm:$0xff] %v353_v23  ;;  %356 = vst [vmem:[%s206_s23 + $0x8] sm:$0xff] %v352_v26 }
 0x11e   : > { %358 = vst [vmem:[%s206_s23 + $0x18] sm:$0xff] %v354_v27 }
 0x11f   : > { %608 = shalt.err (!%p605_p5)
}
 0x120   : > { %s609_s11 = scalar_lea.hbm %s835_s4, 512  ;;  %s613_s6 = scalar_lea.hbm %s887_s3, 1024 }
 0x121   : > { %p610_p4 = scmp.ne.s32.totalorder %s835_s4, %s609_s11  ;;  %p614_p12 = scmp.lt.u32.totalorder %s835_s4, %s887_s3 }
 0x122   : > { %p615_p1 = scmp.lt.u32.totalorder %s613_s6, %s609_s11  ;;  %p617_p8 = scmp.lt.u32.totalorder %s609_s11, %s835_s4 }
 0x123   : > { %p611_p7 = pnand %p610_p4, %p895_p9 }
 0x124   : > { %p616_p3 = por %p615_p1, %p614_p12 }
 0x125   : > { %p612_p10 = pneg %p611_p7 }
 0x126   : > { %p618_p11 = por %p617_p8, %p616_p3 }
 0x128   : > { %p619_p0 = pnand %p618_p11, %p612_p10 }
 0x12a   : > { %622 = shalt.err (!%p619_p0)
}
 0x12b   : > { %489 = dma.vmem_to_hbm [thread:$0]  (%p895_p9), %s837_s28, 512, %s835_s4, %s360_s15  }
 0x12c PF: > { %s388_s10 = sand.u32 1, %s657_s12   ;;  %p896_p6 = scmp.ne.s32.totalorder %s892_s27, 0 }
 0x12d   : > { %p897_p13 = scmp.ge.s32.totalorder %s677_s17, 2  ;;  %s389_s22 = scalar_lea.sflag [#allocation4], %s388_s10 }
 0x12f   : > { %p496_p2 = pnand %p897_p13, %p896_p6 }
 0x131   : > { %652 = dma.done.wait (!%p496_p2), %s389_s22, 512  }
 0x132   : > { %654 = vsyncadd (!%p496_p2), %s389_s22, 4294966784  ;;  %s19_s17 = sadd.s32 1, %s677_s17   ;;  %s898_s12 = smov %s661_s13 }
 0x133   : > { %p16_p5 = scmp.ge.s32.totalorder %s19_s17, 4   ;;  %s899_s13 = smov %s665_s14 }
 0x134   : > { %s900_s14 = smov %s760_s26  ;;  %s901_s15 = smov %s673_s16 }
 0x135   : > { %s902_s16 = smov %s904_s20  ;;  %18 = sbr.rel (!%p16_p5) target bundleno = 6 (0x6), region = 77 }
 0x13c   :  { %394 = vsyncpa [#allocation3], 1 }
 0x13d   :  { %396 = vsyncpa [#allocation3 + $0x1], 1 }
 0x13e   :  { %397 = vsyncpa [#allocation4], 1 }
 0x13f   :  { %399 = vsyncpa [#allocation4 + $0x1], 1 }

</bundles_post_ra>
